<compile_context>
chip_gen: v5e
topology: v5e:2x2
jax: 0.10.0
libtpu: 0.0.40
codegen_flags: <defaults>
</compile_context>

<pallas_src>
import functools

import jax
import jax.numpy as jnp
from jax.experimental import pallas as pl
from jax.experimental.pallas import tpu as pltpu


# ----------------------------- Pallas kernel ------------------------------- #

def _sigmoid(v):
    # exact logistic; stays finite for all fp32 inputs
    return 1.0 / (1.0 + jnp.exp(-v))


def _yolo_kernel(x_ref, g_ref, boxes_ref, confs_ref, *,
                 num_anchors, num_classes, anchors, width, height, scale_x_y):
    # x_ref:     (1, A*(5+nc), THW)   raw head activations (channel-major)
    # g_ref:     (2, THW)             row 0 = grid_x (col idx), row 1 = grid_y
    # boxes_ref: (1, A*4, THW)        per anchor rows: [x1, y1, x2, y2]
    # confs_ref: (1, A*(nc+1), THW)   per anchor rows: [cls*det ..., det]
    A, nc = num_anchors, num_classes
    step = 5 + nc
    inv_w = 1.0 / float(width)
    inv_h = 1.0 / float(height)
    sxy = float(scale_x_y)
    sxy_bias = -0.5 * (sxy - 1.0)

    xb = x_ref[0]                       # (A*(5+nc), THW)
    gx = g_ref[0:1, :]                  # (1, THW)
    gy = g_ref[1:2, :]                  # (1, THW)

    box_rows = []
    conf_rows = []
    for a in range(A):                  # A is static (e.g. 3) -> unrolled
        base = a * step
        tx = xb[base + 0:base + 1, :]
        ty = xb[base + 1:base + 2, :]
        tw = xb[base + 2:base + 3, :]
        th = xb[base + 3:base + 4, :]
        to = xb[base + 4:base + 5, :]
        tc = xb[base + 5:base + step, :]

        bx = (_sigmoid(tx) * sxy + sxy_bias + gx) * inv_w
        by = (_sigmoid(ty) * sxy + sxy_bias + gy) * inv_h
        bw = jnp.exp(tw) * (float(anchors[2 * a]) * inv_w)
        bh = jnp.exp(th) * (float(anchors[2 * a + 1]) * inv_h)
        bx1 = bx - 0.5 * bw
        by1 = by - 0.5 * bh

        det = _sigmoid(to)              # (1, THW)
        cls = _sigmoid(tc)              # (nc, THW)

        box_rows += [bx1, by1, bx1 + bw, by1 + bh]
        conf_rows += [cls * det, det]

    boxes_ref[0] = jnp.concatenate(box_rows, axis=0)    # (A*4, THW)
    confs_ref[0] = jnp.concatenate(conf_rows, axis=0)   # (A*(nc+1), THW)


# ------------------------------ JAX wrapper --------------------------------- #

def yolo_forward_dynamics_pallas(output, num_classes, anchors, num_anchors,
                                 scale_x_y=1.0):
    """Pallas equivalent of yolo_forward_dynamics (inference post-processing)."""
    B, C, H, W = output.shape
    A, nc = num_anchors, num_classes
    assert C == A * (5 + nc), (C, A, nc)
    HW = H * W

    x = output.reshape(B, C, HW).astype(jnp.float32)
    gx = jnp.broadcast_to(jnp.arange(W, dtype=jnp.float32)[None, :], (H, W))
    gy = jnp.broadcast_to(jnp.arange(H, dtype=jnp.float32)[:, None], (H, W))
    grid_xy = jnp.stack([gx.reshape(HW), gy.reshape(HW)], axis=0)   # (2, HW)

    # spatial tile: lane-dense, cdiv grid, no host-side padding
    thw = HW if HW <= 512 else 512
    n_tiles = pl.cdiv(HW, thw)

    kernel = functools.partial(
        _yolo_kernel, num_anchors=A, num_classes=nc,
        anchors=tuple(float(a) for a in anchors),
        width=W, height=H, scale_x_y=scale_x_y)

    n_in = B * C * HW
    cost = pl.CostEstimate(
        flops=12 * n_in,
        transcendentals=n_in,
        bytes_accessed=4 * (n_in + 2 * HW + B * A * (5 + nc) * HW),
    )

    boxes_t, confs_t = pl.pallas_call(
        kernel,
        out_shape=(
            jax.ShapeDtypeStruct((B, A * 4, HW), jnp.float32),
            jax.ShapeDtypeStruct((B, A * (nc + 1), HW), jnp.float32),
        ),
        grid=(B, n_tiles),
        in_specs=[
            pl.BlockSpec((1, C, thw), lambda b, t: (b, 0, t)),
            pl.BlockSpec((2, thw), lambda b, t: (0, t)),
        ],
        out_specs=(
            pl.BlockSpec((1, A * 4, thw), lambda b, t: (b, 0, t)),
            pl.BlockSpec((1, A * (nc + 1), thw), lambda b, t: (b, 0, t)),
        ),
        compiler_params=pltpu.CompilerParams(
            dimension_semantics=("parallel", "parallel")),
        cost_estimate=cost,
    )(x, grid_xy)

    # layout plumbing back to the PyTorch output convention
    boxes = (boxes_t.reshape(B, A, 4, HW)
             .transpose(0, 1, 3, 2)
             .reshape(B, A * HW, 1, 4))
    confs_w = (confs_t.reshape(B, A, nc + 1, HW)
               .transpose(0, 1, 3, 2)
               .reshape(B, A * HW, nc + 1))
    return boxes, confs_w


def yolo_layers_forward(output, *, anchor_mask, num_classes, anchors,
                        num_anchors, stride, scale_x_y=1.0, training=False):
    """Forward pass of the YoloLayers nn.Module."""
    if training:
        return output
    anchor_step = len(anchors) // num_anchors
    masked = []
    for m in anchor_mask:
        masked += list(anchors[m * anchor_step:(m + 1) * anchor_step])
    masked = [a / stride for a in masked]
    return yolo_forward_dynamics_pallas(
        output, num_classes, masked, len(anchor_mask), scale_x_y)


# ---------------------------- pure-JAX reference ----------------------------- #

def ref_yolo_forward(output, num_classes, anchors, num_anchors, scale_x_y=1.0):
    B, C, H, W = output.shape
    A, nc = num_anchors, num_classes
    o = output.reshape(B, A, 5 + nc, H, W).astype(jnp.float32)
    sxy = scale_x_y
    bxy = jax.nn.sigmoid(o[:, :, 0:2]) * sxy - 0.5 * (sxy - 1.0)
    bwh = jnp.exp(o[:, :, 2:4])
    det = jax.nn.sigmoid(o[:, :, 4])
    cls = jax.nn.sigmoid(o[:, :, 5:])
    gx = jnp.broadcast_to(jnp.arange(W, dtype=jnp.float32)[None, :], (H, W))
    gy = jnp.broadcast_to(jnp.arange(H, dtype=jnp.float32)[:, None], (H, W))
    aw = jnp.array(anchors[0::2], jnp.float32).reshape(1, A, 1, 1)
    ah = jnp.array(anchors[1::2], jnp.float32).reshape(1, A, 1, 1)
    bx = (bxy[:, :, 0] + gx) / W
    by = (bxy[:, :, 1] + gy) / H
    bw = bwh[:, :, 0] * aw / W
    bh = bwh[:, :, 1] * ah / H
    bx1 = bx - 0.5 * bw
    by1 = by - 0.5 * bh
    boxes = jnp.stack([bx1, by1, bx1 + bw, by1 + bh], axis=-1)
    boxes = boxes.reshape(B, A * H * W, 1, 4)
    det_f = det.reshape(B, A * H * W, 1)
    cls_f = cls.transpose(0, 1, 3, 4, 2).reshape(B, A * H * W, nc)
    confs_w = jnp.concatenate([cls_f * det_f, det_f], axis=-1)
    return boxes, confs_w


# ---------------------------------- main ------------------------------------- #

if __name__ == "__main__":
    # toy YoloLayers config
    anchor_mask = [0, 1, 2]
    num_classes = 3
    anchors = [12.0, 16.0, 19.0, 36.0, 40.0, 28.0,
               36.0, 75.0, 76.0, 55.0, 72.0, 146.0]
    num_anchors = 6
    stride = 8
    scale_x_y = 1.0

    A = len(anchor_mask)
    B, H, W = 2, 16, 16
    C = A * (5 + num_classes)          # 24 channels

    key = jax.random.PRNGKey(0)
    x = jax.random.normal(key, (B, C, H, W), jnp.float32)

    boxes, confs_w = jax.block_until_ready(
        yolo_layers_forward(x, anchor_mask=anchor_mask, num_classes=num_classes,
                            anchors=anchors, num_anchors=num_anchors,
                            stride=stride, scale_x_y=scale_x_y))

    assert boxes.shape == (B, A * H * W, 1, 4), boxes.shape
    assert confs_w.shape == (B, A * H * W, num_classes + 1), confs_w.shape

    # reference (faithful port of yolo_forward_dynamics with masked anchors)
    anchor_step = len(anchors) // num_anchors
    masked = []
    for m in anchor_mask:
        masked += [a / stride
                   for a in anchors[m * anchor_step:(m + 1) * anchor_step]]
    ref_boxes, ref_confs = jax.block_until_ready(
        ref_yolo_forward(x, num_classes, masked, A, scale_x_y))

    err_b = float(jnp.max(jnp.abs(boxes - ref_boxes)))
    err_c = float(jnp.max(jnp.abs(confs_w - ref_confs)))
    assert err_b < 1e-3, f"boxes mismatch vs reference: {err_b}"
    assert err_c < 1e-3, f"confs mismatch vs reference: {err_c}"

    print("KERNEL_OK")
</pallas_src>

<mosaic_0001>
module attributes {stable_mosaic.version = 11 : i64} {
  func.func @_yolo_kernel(%arg0: i32, %arg1: i32, %arg2: memref<1x24x256xf32, #tpu.memory_space<vmem>>, %arg3: memref<2x256xf32, #tpu.memory_space<vmem>>, %arg4: memref<1x12x256xf32, #tpu.memory_space<vmem>>, %arg5: memref<1x12x256xf32, #tpu.memory_space<vmem>>) attributes {dimension_semantics = [#tpu.dimension_semantics<parallel>, #tpu.dimension_semantics<parallel>], iteration_bounds = array<i64: 2, 1>, scalar_prefetch = 0 : i64, scratch_operands = 0 : i64, tpu.core_type = #tpu.core_type<tc>, window_params = [{transform_indices = @transform_0, window_bounds = array<i64: 1, 24, 256>}, {transform_indices = @transform_1, window_bounds = array<i64: 2, 256>}, {transform_indices = @transform_2, window_bounds = array<i64: 1, 12, 256>}, {transform_indices = @transform_3, window_bounds = array<i64: 1, 12, 256>}]} {
    %c0 = arith.constant 0 : index
    %c0_0 = arith.constant 0 : index
    %c0_1 = arith.constant 0 : index
    %0 = vector.load %arg2[%c0, %c0_0, %c0_1] : memref<1x24x256xf32, #tpu.memory_space<vmem>>, vector<1x24x256xf32>
    %1 = vector.shape_cast %0 : vector<1x24x256xf32> to vector<24x256xf32>
    %c0_2 = arith.constant 0 : index
    %c0_3 = arith.constant 0 : index
    %2 = vector.load %arg3[%c0_2, %c0_3] : memref<2x256xf32, #tpu.memory_space<vmem>>, vector<1x256xf32>
    %c1 = arith.constant 1 : index
    %c0_4 = arith.constant 0 : index
    %3 = vector.load %arg3[%c1, %c0_4] : memref<2x256xf32, #tpu.memory_space<vmem>>, vector<1x256xf32>
    %4 = vector.extract_strided_slice %1 {offsets = [0, 0], sizes = [1, 256], strides = [1, 1]} : vector<24x256xf32> to vector<1x256xf32>
    %5 = vector.extract_strided_slice %1 {offsets = [1, 0], sizes = [1, 256], strides = [1, 1]} : vector<24x256xf32> to vector<1x256xf32>
    %6 = vector.extract_strided_slice %1 {offsets = [2, 0], sizes = [1, 256], strides = [1, 1]} : vector<24x256xf32> to vector<1x256xf32>
    %7 = vector.extract_strided_slice %1 {offsets = [3, 0], sizes = [1, 256], strides = [1, 1]} : vector<24x256xf32> to vector<1x256xf32>
    %8 = vector.extract_strided_slice %1 {offsets = [4, 0], sizes = [1, 256], strides = [1, 1]} : vector<24x256xf32> to vector<1x256xf32>
    %9 = vector.extract_strided_slice %1 {offsets = [5, 0], sizes = [3, 256], strides = [1, 1]} : vector<24x256xf32> to vector<3x256xf32>
    %cst = arith.constant 0.000000e+00 : f32
    %10 = vector.broadcast %cst : f32 to vector<1x256xf32>
    %11 = arith.subf %10, %4 : vector<1x256xf32>
    %12 = math.exp %11 : vector<1x256xf32>
    %cst_5 = arith.constant 1.000000e+00 : f32
    %13 = vector.broadcast %cst_5 : f32 to vector<1x256xf32>
    %14 = arith.addf %13, %12 : vector<1x256xf32>
    %cst_6 = arith.constant 1.000000e+00 : f32
    %15 = vector.broadcast %cst_6 : f32 to vector<1x256xf32>
    %16 = arith.divf %15, %14 : vector<1x256xf32>
    %cst_7 = arith.constant 1.000000e+00 : f32
    %17 = vector.broadcast %cst_7 : f32 to vector<1x256xf32>
    %18 = arith.mulf %16, %17 : vector<1x256xf32>
    %cst_8 = arith.constant -0.000000e+00 : f32
    %19 = vector.broadcast %cst_8 : f32 to vector<1x256xf32>
    %20 = arith.addf %18, %19 : vector<1x256xf32>
    %21 = arith.addf %20, %2 : vector<1x256xf32>
    %cst_9 = arith.constant 6.250000e-02 : f32
    %22 = vector.broadcast %cst_9 : f32 to vector<1x256xf32>
    %23 = arith.mulf %21, %22 : vector<1x256xf32>
    %cst_10 = arith.constant 0.000000e+00 : f32
    %24 = vector.broadcast %cst_10 : f32 to vector<1x256xf32>
    %25 = arith.subf %24, %5 : vector<1x256xf32>
    %26 = math.exp %25 : vector<1x256xf32>
    %cst_11 = arith.constant 1.000000e+00 : f32
    %27 = vector.broadcast %cst_11 : f32 to vector<1x256xf32>
    %28 = arith.addf %27, %26 : vector<1x256xf32>
    %cst_12 = arith.constant 1.000000e+00 : f32
    %29 = vector.broadcast %cst_12 : f32 to vector<1x256xf32>
    %30 = arith.divf %29, %28 : vector<1x256xf32>
    %cst_13 = arith.constant 1.000000e+00 : f32
    %31 = vector.broadcast %cst_13 : f32 to vector<1x256xf32>
    %32 = arith.mulf %30, %31 : vector<1x256xf32>
    %cst_14 = arith.constant -0.000000e+00 : f32
    %33 = vector.broadcast %cst_14 : f32 to vector<1x256xf32>
    %34 = arith.addf %32, %33 : vector<1x256xf32>
    %35 = arith.addf %34, %3 : vector<1x256xf32>
    %cst_15 = arith.constant 6.250000e-02 : f32
    %36 = vector.broadcast %cst_15 : f32 to vector<1x256xf32>
    %37 = arith.mulf %35, %36 : vector<1x256xf32>
    %38 = math.exp %6 : vector<1x256xf32>
    %cst_16 = arith.constant 9.375000e-02 : f32
    %39 = vector.broadcast %cst_16 : f32 to vector<1x256xf32>
    %40 = arith.mulf %38, %39 : vector<1x256xf32>
    %41 = math.exp %7 : vector<1x256xf32>
    %cst_17 = arith.constant 1.250000e-01 : f32
    %42 = vector.broadcast %cst_17 : f32 to vector<1x256xf32>
    %43 = arith.mulf %41, %42 : vector<1x256xf32>
    %cst_18 = arith.constant 5.000000e-01 : f32
    %44 = vector.broadcast %cst_18 : f32 to vector<1x256xf32>
    %45 = arith.mulf %44, %40 : vector<1x256xf32>
    %46 = arith.subf %23, %45 : vector<1x256xf32>
    %cst_19 = arith.constant 5.000000e-01 : f32
    %47 = vector.broadcast %cst_19 : f32 to vector<1x256xf32>
    %48 = arith.mulf %47, %43 : vector<1x256xf32>
    %49 = arith.subf %37, %48 : vector<1x256xf32>
    %cst_20 = arith.constant 0.000000e+00 : f32
    %50 = vector.broadcast %cst_20 : f32 to vector<1x256xf32>
    %51 = arith.subf %50, %8 : vector<1x256xf32>
    %52 = math.exp %51 : vector<1x256xf32>
    %cst_21 = arith.constant 1.000000e+00 : f32
    %53 = vector.broadcast %cst_21 : f32 to vector<1x256xf32>
    %54 = arith.addf %53, %52 : vector<1x256xf32>
    %cst_22 = arith.constant 1.000000e+00 : f32
    %55 = vector.broadcast %cst_22 : f32 to vector<1x256xf32>
    %56 = arith.divf %55, %54 : vector<1x256xf32>
    %cst_23 = arith.constant 0.000000e+00 : f32
    %57 = vector.broadcast %cst_23 : f32 to vector<3x256xf32>
    %58 = arith.subf %57, %9 : vector<3x256xf32>
    %59 = math.exp %58 : vector<3x256xf32>
    %cst_24 = arith.constant 1.000000e+00 : f32
    %60 = vector.broadcast %cst_24 : f32 to vector<3x256xf32>
    %61 = arith.addf %60, %59 : vector<3x256xf32>
    %cst_25 = arith.constant 1.000000e+00 : f32
    %62 = vector.broadcast %cst_25 : f32 to vector<3x256xf32>
    %63 = arith.divf %62, %61 : vector<3x256xf32>
    %64 = arith.addf %46, %40 : vector<1x256xf32>
    %65 = arith.addf %49, %43 : vector<1x256xf32>
    %66 = vector.broadcast %56 : vector<1x256xf32> to vector<3x256xf32>
    %67 = arith.mulf %63, %66 : vector<3x256xf32>
    %68 = vector.extract_strided_slice %1 {offsets = [8, 0], sizes = [1, 256], strides = [1, 1]} : vector<24x256xf32> to vector<1x256xf32>
    %69 = vector.extract_strided_slice %1 {offsets = [9, 0], sizes = [1, 256], strides = [1, 1]} : vector<24x256xf32> to vector<1x256xf32>
    %70 = vector.extract_strided_slice %1 {offsets = [10, 0], sizes = [1, 256], strides = [1, 1]} : vector<24x256xf32> to vector<1x256xf32>
    %71 = vector.extract_strided_slice %1 {offsets = [11, 0], sizes = [1, 256], strides = [1, 1]} : vector<24x256xf32> to vector<1x256xf32>
    %72 = vector.extract_strided_slice %1 {offsets = [12, 0], sizes = [1, 256], strides = [1, 1]} : vector<24x256xf32> to vector<1x256xf32>
    %73 = vector.extract_strided_slice %1 {offsets = [13, 0], sizes = [3, 256], strides = [1, 1]} : vector<24x256xf32> to vector<3x256xf32>
    %cst_26 = arith.constant 0.000000e+00 : f32
    %74 = vector.broadcast %cst_26 : f32 to vector<1x256xf32>
    %75 = arith.subf %74, %68 : vector<1x256xf32>
    %76 = math.exp %75 : vector<1x256xf32>
    %cst_27 = arith.constant 1.000000e+00 : f32
    %77 = vector.broadcast %cst_27 : f32 to vector<1x256xf32>
    %78 = arith.addf %77, %76 : vector<1x256xf32>
    %cst_28 = arith.constant 1.000000e+00 : f32
    %79 = vector.broadcast %cst_28 : f32 to vector<1x256xf32>
    %80 = arith.divf %79, %78 : vector<1x256xf32>
    %cst_29 = arith.constant 1.000000e+00 : f32
    %81 = vector.broadcast %cst_29 : f32 to vector<1x256xf32>
    %82 = arith.mulf %80, %81 : vector<1x256xf32>
    %cst_30 = arith.constant -0.000000e+00 : f32
    %83 = vector.broadcast %cst_30 : f32 to vector<1x256xf32>
    %84 = arith.addf %82, %83 : vector<1x256xf32>
    %85 = arith.addf %84, %2 : vector<1x256xf32>
    %cst_31 = arith.constant 6.250000e-02 : f32
    %86 = vector.broadcast %cst_31 : f32 to vector<1x256xf32>
    %87 = arith.mulf %85, %86 : vector<1x256xf32>
    %cst_32 = arith.constant 0.000000e+00 : f32
    %88 = vector.broadcast %cst_32 : f32 to vector<1x256xf32>
    %89 = arith.subf %88, %69 : vector<1x256xf32>
    %90 = math.exp %89 : vector<1x256xf32>
    %cst_33 = arith.constant 1.000000e+00 : f32
    %91 = vector.broadcast %cst_33 : f32 to vector<1x256xf32>
    %92 = arith.addf %91, %90 : vector<1x256xf32>
    %cst_34 = arith.constant 1.000000e+00 : f32
    %93 = vector.broadcast %cst_34 : f32 to vector<1x256xf32>
    %94 = arith.divf %93, %92 : vector<1x256xf32>
    %cst_35 = arith.constant 1.000000e+00 : f32
    %95 = vector.broadcast %cst_35 : f32 to vector<1x256xf32>
    %96 = arith.mulf %94, %95 : vector<1x256xf32>
    %cst_36 = arith.constant -0.000000e+00 : f32
    %97 = vector.broadcast %cst_36 : f32 to vector<1x256xf32>
    %98 = arith.addf %96, %97 : vector<1x256xf32>
    %99 = arith.addf %98, %3 : vector<1x256xf32>
    %cst_37 = arith.constant 6.250000e-02 : f32
    %100 = vector.broadcast %cst_37 : f32 to vector<1x256xf32>
    %101 = arith.mulf %99, %100 : vector<1x256xf32>
    %102 = math.exp %70 : vector<1x256xf32>
    %cst_38 = arith.constant 0.1484375 : f32
    %103 = vector.broadcast %cst_38 : f32 to vector<1x256xf32>
    %104 = arith.mulf %102, %103 : vector<1x256xf32>
    %105 = math.exp %71 : vector<1x256xf32>
    %cst_39 = arith.constant 2.812500e-01 : f32
    %106 = vector.broadcast %cst_39 : f32 to vector<1x256xf32>
    %107 = arith.mulf %105, %106 : vector<1x256xf32>
    %cst_40 = arith.constant 5.000000e-01 : f32
    %108 = vector.broadcast %cst_40 : f32 to vector<1x256xf32>
    %109 = arith.mulf %108, %104 : vector<1x256xf32>
    %110 = arith.subf %87, %109 : vector<1x256xf32>
    %cst_41 = arith.constant 5.000000e-01 : f32
    %111 = vector.broadcast %cst_41 : f32 to vector<1x256xf32>
    %112 = arith.mulf %111, %107 : vector<1x256xf32>
    %113 = arith.subf %101, %112 : vector<1x256xf32>
    %cst_42 = arith.constant 0.000000e+00 : f32
    %114 = vector.broadcast %cst_42 : f32 to vector<1x256xf32>
    %115 = arith.subf %114, %72 : vector<1x256xf32>
    %116 = math.exp %115 : vector<1x256xf32>
    %cst_43 = arith.constant 1.000000e+00 : f32
    %117 = vector.broadcast %cst_43 : f32 to vector<1x256xf32>
    %118 = arith.addf %117, %116 : vector<1x256xf32>
    %cst_44 = arith.constant 1.000000e+00 : f32
    %119 = vector.broadcast %cst_44 : f32 to vector<1x256xf32>
    %120 = arith.divf %119, %118 : vector<1x256xf32>
    %cst_45 = arith.constant 0.000000e+00 : f32
    %121 = vector.broadcast %cst_45 : f32 to vector<3x256xf32>
    %122 = arith.subf %121, %73 : vector<3x256xf32>
    %123 = math.exp %122 : vector<3x256xf32>
    %cst_46 = arith.constant 1.000000e+00 : f32
    %124 = vector.broadcast %cst_46 : f32 to vector<3x256xf32>
    %125 = arith.addf %124, %123 : vector<3x256xf32>
    %cst_47 = arith.constant 1.000000e+00 : f32
    %126 = vector.broadcast %cst_47 : f32 to vector<3x256xf32>
    %127 = arith.divf %126, %125 : vector<3x256xf32>
    %128 = arith.addf %110, %104 : vector<1x256xf32>
    %129 = arith.addf %113, %107 : vector<1x256xf32>
    %130 = vector.broadcast %120 : vector<1x256xf32> to vector<3x256xf32>
    %131 = arith.mulf %127, %130 : vector<3x256xf32>
    %132 = vector.extract_strided_slice %1 {offsets = [16, 0], sizes = [1, 256], strides = [1, 1]} : vector<24x256xf32> to vector<1x256xf32>
    %133 = vector.extract_strided_slice %1 {offsets = [17, 0], sizes = [1, 256], strides = [1, 1]} : vector<24x256xf32> to vector<1x256xf32>
    %134 = vector.extract_strided_slice %1 {offsets = [18, 0], sizes = [1, 256], strides = [1, 1]} : vector<24x256xf32> to vector<1x256xf32>
    %135 = vector.extract_strided_slice %1 {offsets = [19, 0], sizes = [1, 256], strides = [1, 1]} : vector<24x256xf32> to vector<1x256xf32>
    %136 = vector.extract_strided_slice %1 {offsets = [20, 0], sizes = [1, 256], strides = [1, 1]} : vector<24x256xf32> to vector<1x256xf32>
    %137 = vector.extract_strided_slice %1 {offsets = [21, 0], sizes = [3, 256], strides = [1, 1]} : vector<24x256xf32> to vector<3x256xf32>
    %cst_48 = arith.constant 0.000000e+00 : f32
    %138 = vector.broadcast %cst_48 : f32 to vector<1x256xf32>
    %139 = arith.subf %138, %132 : vector<1x256xf32>
    %140 = math.exp %139 : vector<1x256xf32>
    %cst_49 = arith.constant 1.000000e+00 : f32
    %141 = vector.broadcast %cst_49 : f32 to vector<1x256xf32>
    %142 = arith.addf %141, %140 : vector<1x256xf32>
    %cst_50 = arith.constant 1.000000e+00 : f32
    %143 = vector.broadcast %cst_50 : f32 to vector<1x256xf32>
    %144 = arith.divf %143, %142 : vector<1x256xf32>
    %cst_51 = arith.constant 1.000000e+00 : f32
    %145 = vector.broadcast %cst_51 : f32 to vector<1x256xf32>
    %146 = arith.mulf %144, %145 : vector<1x256xf32>
    %cst_52 = arith.constant -0.000000e+00 : f32
    %147 = vector.broadcast %cst_52 : f32 to vector<1x256xf32>
    %148 = arith.addf %146, %147 : vector<1x256xf32>
    %149 = arith.addf %148, %2 : vector<1x256xf32>
    %cst_53 = arith.constant 6.250000e-02 : f32
    %150 = vector.broadcast %cst_53 : f32 to vector<1x256xf32>
    %151 = arith.mulf %149, %150 : vector<1x256xf32>
    %cst_54 = arith.constant 0.000000e+00 : f32
    %152 = vector.broadcast %cst_54 : f32 to vector<1x256xf32>
    %153 = arith.subf %152, %133 : vector<1x256xf32>
    %154 = math.exp %153 : vector<1x256xf32>
    %cst_55 = arith.constant 1.000000e+00 : f32
    %155 = vector.broadcast %cst_55 : f32 to vector<1x256xf32>
    %156 = arith.addf %155, %154 : vector<1x256xf32>
    %cst_56 = arith.constant 1.000000e+00 : f32
    %157 = vector.broadcast %cst_56 : f32 to vector<1x256xf32>
    %158 = arith.divf %157, %156 : vector<1x256xf32>
    %cst_57 = arith.constant 1.000000e+00 : f32
    %159 = vector.broadcast %cst_57 : f32 to vector<1x256xf32>
    %160 = arith.mulf %158, %159 : vector<1x256xf32>
    %cst_58 = arith.constant -0.000000e+00 : f32
    %161 = vector.broadcast %cst_58 : f32 to vector<1x256xf32>
    %162 = arith.addf %160, %161 : vector<1x256xf32>
    %163 = arith.addf %162, %3 : vector<1x256xf32>
    %cst_59 = arith.constant 6.250000e-02 : f32
    %164 = vector.broadcast %cst_59 : f32 to vector<1x256xf32>
    %165 = arith.mulf %163, %164 : vector<1x256xf32>
    %166 = math.exp %134 : vector<1x256xf32>
    %cst_60 = arith.constant 3.125000e-01 : f32
    %167 = vector.broadcast %cst_60 : f32 to vector<1x256xf32>
    %168 = arith.mulf %166, %167 : vector<1x256xf32>
    %169 = math.exp %135 : vector<1x256xf32>
    %cst_61 = arith.constant 2.187500e-01 : f32
    %170 = vector.broadcast %cst_61 : f32 to vector<1x256xf32>
    %171 = arith.mulf %169, %170 : vector<1x256xf32>
    %cst_62 = arith.constant 5.000000e-01 : f32
    %172 = vector.broadcast %cst_62 : f32 to vector<1x256xf32>
    %173 = arith.mulf %172, %168 : vector<1x256xf32>
    %174 = arith.subf %151, %173 : vector<1x256xf32>
    %cst_63 = arith.constant 5.000000e-01 : f32
    %175 = vector.broadcast %cst_63 : f32 to vector<1x256xf32>
    %176 = arith.mulf %175, %171 : vector<1x256xf32>
    %177 = arith.subf %165, %176 : vector<1x256xf32>
    %cst_64 = arith.constant 0.000000e+00 : f32
    %178 = vector.broadcast %cst_64 : f32 to vector<1x256xf32>
    %179 = arith.subf %178, %136 : vector<1x256xf32>
    %180 = math.exp %179 : vector<1x256xf32>
    %cst_65 = arith.constant 1.000000e+00 : f32
    %181 = vector.broadcast %cst_65 : f32 to vector<1x256xf32>
    %182 = arith.addf %181, %180 : vector<1x256xf32>
    %cst_66 = arith.constant 1.000000e+00 : f32
    %183 = vector.broadcast %cst_66 : f32 to vector<1x256xf32>
    %184 = arith.divf %183, %182 : vector<1x256xf32>
    %cst_67 = arith.constant 0.000000e+00 : f32
    %185 = vector.broadcast %cst_67 : f32 to vector<3x256xf32>
    %186 = arith.subf %185, %137 : vector<3x256xf32>
    %187 = math.exp %186 : vector<3x256xf32>
    %cst_68 = arith.constant 1.000000e+00 : f32
    %188 = vector.broadcast %cst_68 : f32 to vector<3x256xf32>
    %189 = arith.addf %188, %187 : vector<3x256xf32>
    %cst_69 = arith.constant 1.000000e+00 : f32
    %190 = vector.broadcast %cst_69 : f32 to vector<3x256xf32>
    %191 = arith.divf %190, %189 : vector<3x256xf32>
    %192 = arith.addf %174, %168 : vector<1x256xf32>
    %193 = arith.addf %177, %171 : vector<1x256xf32>
    %194 = vector.broadcast %184 : vector<1x256xf32> to vector<3x256xf32>
    %195 = arith.mulf %191, %194 : vector<3x256xf32>
    %196 = tpu.concatenate %46, %49, %64, %65, %110, %113, %128, %129, %174, %177, %192, %193 in 0 : vector<1x256xf32>, vector<1x256xf32>, vector<1x256xf32>, vector<1x256xf32>, vector<1x256xf32>, vector<1x256xf32>, vector<1x256xf32>, vector<1x256xf32>, vector<1x256xf32>, vector<1x256xf32>, vector<1x256xf32>, vector<1x256xf32> -> vector<12x256xf32>
    %c0_70 = arith.constant 0 : index
    %c0_71 = arith.constant 0 : index
    %c0_72 = arith.constant 0 : index
    %197 = vector.load %arg4[%c0_70, %c0_71, %c0_72] : memref<1x12x256xf32, #tpu.memory_space<vmem>>, vector<1x12x256xf32>
    %198 = vector.shape_cast %197 : vector<1x12x256xf32> to vector<12x256xf32>
    %199 = vector.shape_cast %196 : vector<12x256xf32> to vector<1x12x256xf32>
    tpu.vector_store %arg4[%c0_70, %c0_71, %c0_72], %199 {strides = array<i32>} : memref<1x12x256xf32, #tpu.memory_space<vmem>>, vector<1x12x256xf32>,
    %200 = tpu.concatenate %67, %56, %131, %120, %195, %184 in 0 : vector<3x256xf32>, vector<1x256xf32>, vector<3x256xf32>, vector<1x256xf32>, vector<3x256xf32>, vector<1x256xf32> -> vector<12x256xf32>
    %c0_73 = arith.constant 0 : index
    %c0_74 = arith.constant 0 : index
    %c0_75 = arith.constant 0 : index
    %201 = vector.load %arg5[%c0_73, %c0_74, %c0_75] : memref<1x12x256xf32, #tpu.memory_space<vmem>>, vector<1x12x256xf32>
    %202 = vector.shape_cast %201 : vector<1x12x256xf32> to vector<12x256xf32>
    %203 = vector.shape_cast %200 : vector<12x256xf32> to vector<1x12x256xf32>
    tpu.vector_store %arg5[%c0_73, %c0_74, %c0_75], %203 {strides = array<i32>} : memref<1x12x256xf32, #tpu.memory_space<vmem>>, vector<1x12x256xf32>,
    return
  }
  func.func @transform_0(%arg0: i32, %arg1: i32) -> (i32, i32, i32) {
    %c0_i32 = arith.constant 0 : i32
    %c0_i32_0 = arith.constant 0 : i32
    return %arg0, %c0_i32, %arg1 : i32, i32, i32
  }
  func.func @transform_1(%arg0: i32, %arg1: i32) -> (i32, i32) {
    %c0_i32 = arith.constant 0 : i32
    %c0_i32_0 = arith.constant 0 : i32
    return %c0_i32, %arg1 : i32, i32
  }
  func.func @transform_2(%arg0: i32, %arg1: i32) -> (i32, i32, i32) {
    %c0_i32 = arith.constant 0 : i32
    %c0_i32_0 = arith.constant 0 : i32
    return %arg0, %c0_i32, %arg1 : i32, i32, i32
  }
  func.func @transform_3(%arg0: i32, %arg1: i32) -> (i32, i32, i32) {
    %c0_i32 = arith.constant 0 : i32
    %c0_i32_0 = arith.constant 0 : i32
    return %arg0, %c0_i32, %arg1 : i32, i32, i32
  }
}

</mosaic_0001>

<bundles_post_ra>
// kernel: tpu_custom_call.1
= control target key start
LH: loop header
LB: loop body
LE: loop exit
PB: predicated region body
PF: predicated region fallthrough
CT: control target
= control target key end

     0   :  { %9 = vsyncpa [#allocation3], 0  ;;  %s1556_s0 = inlined_call_operand.hbm [shape: f32[2,24,256], index: 0, kind: input, shape index: {}]   ;;  %s1557_s1 = inlined_call_operand.hbm [shape: f32[2,256], index: 1, kind: input, shape index: {}]   ;;  %s1558_s2 = inlined_call_operand.vmem [shape: f32[2,12,256], index: 2, kind: output, shape index: {0}]   ;;  %s1559_s3 = inlined_call_operand.vmem [shape: f32[2,12,256], index: 3, kind: output, shape index: {1}]  }
   0x1   :  { %11 = vsyncpa [#allocation3 + $0x1], 0 }
   0x2   :  { %12 = vsyncpa [#allocation5], 0  ;;  %s1116_s12 = smov 0   ;;  %s1118_s13 = smov 0  }
   0x3   :  { %s1120_s14 = smov 0   ;;  %s1122_s15 = smov 0  }
   0x4   :  { %s1124_s16 = smov 0   ;;  %s1126_s17 = smov 0  }
   0x5 LB: > { %s854_s18 = sadd.s32 4294967295, %s1091_s17   ;;  %s39_s19 = sadd.s32 1, %s1079_s14  ;;  %s1091_s17 = sphi %s1126_s17, %s18_s17   ;;  %s1087_s16 = sphi %s1124_s16, %s1585_s16   ;;  %s1083_s15 = sphi %s1122_s15, %s1584_s15   ;;  %s1079_s14 = sphi %s1120_s14, %s1583_s14   ;;  %s1075_s13 = sphi %s1118_s13, %s1582_s13   ;;  %s1071_s12 = sphi %s1116_s12, %s1581_s12  }
   0x6   : > { %p46_p0 = scmp.ne.s32.totalorder %s1079_s14, %s1075_s13  ;;  %p47_p1 = scmp.eq.s32.totalorder %s1091_s17, 0 }
   0x7   : > { %p52_p2 = scmp.ne.s32.totalorder %s1075_s13, %s1071_s12  ;;  %p1150_p3 = scmp.eq.s32.totalorder %s854_s18, 0 }
   0x8   : > { %p1154_p4 = por %p47_p1, %p46_p0  ;;  %p856_p5 = scmp.ge.s32.totalorder %s1091_s17, 1 }
   0x9   : > { %p1161_p6 = por %p1150_p3, %p52_p2  ;;  %p145_p7 = scmp.lt.s32.totalorder %s1091_s17, 3 }
   0xa   : > { %s160_s25 = sshll.u32 %s1557_s1, 4  ;;  %s1093_s27 = smov [#allocation4]   ;;  %s161_s25 = int_to_ptr.hbm [resolvable:$true] %s160_s25 }
   0xb   : > { %p1169_p8 = pnand %p856_p5, %p145_p7  ;;  %s162_s28 = sshll.u32 %s1093_s27, 4  ;;  %s163_s28 = int_to_ptr.vmem [resolvable:$true] %s162_s28 }
   0xc   : > { %p888_p10 = scmp.lt.s32.totalorder %s1091_s17, 2  ;;  %s30_s30 = sadd.s32 1, %s1087_s16 }
   0xd   : > { %p879_p9 = pneg %p1169_p8  ;;  %p32_p13 = scmp.ge.s32.totalorder %s30_s30, 2 }
   0xe   : > { %p1180_p12 = pnand %p888_p10, %p1154_p4  ;;  %s173_s4 = sand.u32 1, %s1079_s14  }
   0xf   : > { %p880_p11 = pnand %p879_p9, %p1150_p3  ;;  %s871_s5 = smul.u32 48, %s1087_s16 }
  0x10   : > { %s1587_s30 = smov (%p32_p13, %s30_s30), 0  ;;  %s870_s6 = smul.u32 48, %s173_s4 }
  0x11   : > { %882 = dma.hbm_to_vmem [thread:$0]  (!%p880_p11), %s161_s25, 64, %s163_s28, [#allocation5]  }
  0x12   : > { %s34_s7 = ssub.s32 %s1087_s16, %s1587_s30  ;;  %s184_s10 = scalar_lea.hbm %s1556_s0, %s871_s5 }
  0x13   : > { %p37_p0 = scmp.eq.s32.totalorder %s34_s7, 0  ;;  %s185_s11 = sshll.u32 %s184_s10, 4  ;;  %s186_s11 = int_to_ptr.hbm [resolvable:$true] %s185_s11 }
  0x14   : > { %s177_s12 = scalar_lea.vmem [#allocation2], %s870_s6  ;;  %s174_s23 = scalar_lea.sflag [#allocation3], %s173_s4 }
  0x15   : > { %s187_s18 = sshll.u32 %s177_s12, 4  ;;  %s1094_s24 = smov 256   ;;  %s188_s18 = int_to_ptr.vmem [resolvable:$true] %s187_s18 }
  0x16   : > { %s1197_s21 = scalar_select %p37_p0, %s1079_s14, %s39_s19  }
  0x17   : > { %s1095_s25 = smov 16   ;;  %199 = sbr.rel (%p1169_p8) target bundleno = 123 (0x7b), region = 28 }
  0x18   : > { %886 = dma.hbm_to_vmem [thread:$0]  (!%p1180_p12), %s186_s11, 768, %s188_s18, %s174_s23, %s1094_s24, %s1094_s24, %s1095_s25  }
  0x19   : > { %s201_s27 = sand.u32 (!%p1169_p8), 1, %s1075_s13  }
  0x1a   : > { %s872_s28 = smul.u32 (!%p1169_p8), 48, %s201_s27  ;;  %s202_s5 = scalar_lea.sflag (!%p1169_p8), [#allocation3], %s201_s27 }
  0x1c   : > { %s205_s6 = scalar_lea.vmem [#allocation2], %s872_s28 }
  0x1d   : > { %1062 = dma.done.wait (%p1161_p6), %s202_s5, 768  }
  0x1e   : > { %1064 = vsyncadd (%p1161_p6), %s202_s5, 4294966528 }
  0x1f   : > { %1066 = dma.done.wait (%p1150_p3), [#allocation5], 64  }
  0x20   : > { %1068 = vsyncadd (%p1150_p3), [#allocation5], 4294967232  ;;  %v269_v0 = vld [vmem:[%s205_s6] sm:$0xff]  ;;  %v271_v1 = vld [vmem:[%s205_s6 + $0x10] sm:$0xff]  ;;  %vm618_vm8 = vcmask 1040384   ;;  %vm621_vm13 = vcmask 1041408  }
  0x21   : > { %v278_v2 = vsub.f32 0.0, %v269_v0  ;;  %v382_v3 = vsub.f32 0.0, %v271_v1  ;;  %v334_v4 = vmul.f32 1.442695, %v269_v0  ;;  %v428_v5 = vmul.f32 1.442695, %v271_v1 }
  0x22   : > { %v270_v6 = vld [vmem:[%s205_s6 + $0x8] sm:$0xff]  ;;  %v272_v9 = vld [vmem:[%s205_s6 + $0x18] sm:$0xff]  ;;  %v273_v12 = vld [vmem:[%s205_s6 + $0x20] sm:$0xff]  ;;  %vm624_vm15 = vcmask 1042432   ;;  %p250_p1 = scmp.lt.s32.totalorder %s1083_s15, 1 }
  0x23   : > { %v280_v7 = vmul.f32 1.442695, %v278_v2  ;;  %v384_v8 = vmul.f32 1.442695, %v382_v3  ;;  %v279_v10 = vsub.f32 0.0, %v270_v6  ;;  %941 = vpow2.f32 %v334_v4  ;;  %v1212_v17 = vld [vmem:[%s205_s6 + $0x28] sm:$0xff] }
  0x24   : > { %v383_v11 = vsub.f32 0.0, %v272_v9  ;;  %v476_v14 = vsub.f32 0.0, %v273_v12  ;;  %v336_v15 = vmul.f32 1.442695, %v270_v6  ;;  %v430_v19 = vmul.f32 1.442695, %v272_v9 }
  0x25   : > { %943 = vpow2.f32 %v280_v7  ;;  %v282_v13 = vmul.f32 1.442695, %v279_v10  ;;  %v275_v18 = vld [vmem:[#allocation4] ss:$2 sm:$0x3]  ;;  %v477_v23 = vsub.f32 0.0, %v1212_v17 }
  0x26   : > { %945 = vpow2.f32 %v384_v8  ;;  %v386_v16 = vmul.f32 1.442695, %v383_v11  ;;  %v277_v20 = vld [vmem:[#allocation4 + $0x1] ss:$2 sm:$0x3]  ;;  %v1221_v29 = vperm.slane %v275_v18, 0 }
  0x27   : > { %947 = vpow2.f32 %v428_v5  ;;  %v478_v21 = vmul.f32 1.442695, %v476_v14  ;;  %v1223_v30 = vperm.slane %v277_v20, 0  ;;  %v1231_v34 = vperm.slane %v275_v18, 1  ;;  %s1589_s15 = smov (!%p250_p1, %s1083_s15), 1 }
  0x28   : > { %949 = vpow2.f32 %v282_v13  ;;  %v1235_v36 = vperm.slane %v277_v20, 1  ;;  %v1237_v37 = vmul.f32 1.442695, %v477_v23  ;;  %v1244_v42 = vmul.f32 1.442695, %v273_v12  ;;  %s868_s19 = sshll.u32 %s1589_s15, 5 }
  0x29   : > { %v942_v22 = vpop.eup %941  ;;  %951 = vpow2.f32 %v336_v15  ;;  %s1454_s26 = scalar_lea.vmem %s1558_s2, %s868_s19  ;;  %s1513_s7 = scalar_lea.vmem %s1559_s3, %s868_s19 }
  0x2a   : > { %v1215_v25 = vmul.f32 0.09375, %v942_v22  ;;  %v1217_v26 = vmul.f32 0.125, %v942_v22  ;;  %953 = vpow2.f32 %v386_v16 }
  0x2b   : > { %v944_v24 = vpop.eup %943  ;;  %955 = vpow2.f32 %v430_v19 }
  0x2c   : > { %v946_v27 = vpop.eup %945  ;;  %v1219_v28 = vadd.f32 1.0, %v944_v24  ;;  %v1226_v32 = vmul.f32 0.5, %v1215_v25  ;;  %v1229_v33 = vmul.f32 0.5, %v1217_v26  ;;  %957 = vpow2.f32 %v478_v21 }
  0x2d   : > { %v948_v31 = vpop.eup %947  ;;  %v1240_v40 = vadd.f32 1.0, %v946_v27  ;;  %v364_v44 = vrot.slane %v1215_v25, 2  ;;  %v372_v45 = vrot.slane %v1217_v26, 2 }
  0x2e   : > { %959 = vrcp.f32 %v1219_v28  ;;  %v297_v35 = vand.u32 2147483648, %v1219_v28  ;;  %v950_v38 = vpop.eup %949  ;;  %v295_v39 = vand.u32 2147483647, %v1219_v28  ;;  %v1242_v41 = vmul.f32 0.1484375, %v948_v31 }
  0x2f   : > { %v952_v43 = vpop.eup %951  ;;  %vm291_vm0 = vweird.f32 %v1219_v28  ;;  %v1249_v46 = vmul.f32 0.28125, %v948_v31  ;;  %v346_v48 = vrot.slane %v1226_v32, 2  ;;  %v356_v49 = vrot.slane %v1229_v33, 2 }
  0x30   : > { %v954_v47 = vpop.eup %953  ;;  %961 = vrcp.f32 %v1240_v40  ;;  %v401_v50 = vand.u32 2147483648, %v1240_v40  ;;  %v298_v52 = vor.u32 1.1754944e-38, %v297_v35  ;;  %v399_v53 = vand.u32 2147483647, %v1240_v40 }
  0x31   : > { %v956_v51 = vpop.eup %955  ;;  %v1257_v54 = vmul.f32 0.5, %v1242_v41  ;;  %v1260_v55 = vmul.f32 0.5, %v1249_v46  ;;  %vm1262_vm1 = vcmp.eq.f32.partialorder %v295_v39, 8.507059e+37  ;;  %vm395_vm2 = vweird.f32 %v1240_v40 }
  0x32   : > { %v958_v56 = vpop.eup %957  ;;  %v458_v58 = vrot.slane %v1242_v41, 2  ;;  %v1268_v59 = vadd.f32 1.0, %v950_v38  ;;  %v1270_v60 = vmul.f32 0.09375, %v952_v43  ;;  %v1272_v62 = vor.u32 1.1754944e-38, %v401_v50 }
  0x33   : > { %v466_v63 = vrot.slane %v1249_v46, 2  ;;  %v1275_v0 = vmul.f32 0.125, %v952_v43  ;;  %v1277_v1 = vadd.f32 1.0, %v954_v47  ;;  %v440_v3 = vrot.slane %v1257_v54, 2 }
  0x34   : > { %v960_v61 = vpop.eup %959  ;;  %v450_v4 = vrot.slane %v1260_v55, 2  ;;  %963 = vrcp.f32 %v1268_v59  ;;  %vm1283_vm3 = vcmp.eq.f32.partialorder %v399_v53, 8.507059e+37  ;;  %v310_v6 = vand.u32 2147483647, %v1268_v59 }
  0x35   : > { %v287_v2 = vmul.f32 %v960_v61, %v1219_v28  ;;  %v312_v7 = vand.u32 2147483648, %v1268_v59  ;;  %v1290_v8 = vmul.f32 0.5, %v1270_v60  ;;  %v1293_v9 = vmul.f32 0.5, %v1275_v0 }
  0x36   : > { %v962_v10 = vpop.eup %961  ;;  %vm292_vm4 = vweird.f32 %v960_v61  ;;  %vm306_vm5 = vweird.f32 %v1268_v59  ;;  %965 = vrcp.f32 %v1277_v1  ;;  %v365_v13 = vrot.slane %v1270_v60, 2 }
  0x37   : > { %v288_v11 = vsub.f32 1.0, %v287_v2  ;;  %v391_v12 = vmul.f32 %v962_v10, %v1240_v40  ;;  %vm396_vm6 = vweird.f32 %v962_v10  ;;  %v373_v14 = vrot.slane %v1275_v0, 2  ;;  %vm1306_vm7 = vmor %vm291_vm0, %vm292_vm4 }
  0x38   : > { %v1300_v16 = vor.u32 1.1754944e-38, %v312_v7  ;;  %v347_v18 = vrot.slane %v1290_v8, 2  ;;  %v357_v19 = vrot.slane %v1293_v9, 2  ;;  %vm1310_vm9 = vcmp.eq.f32.partialorder %v310_v6, 8.507059e+37  ;;  %vm1332_vm12 = vmor %vm395_vm2, %vm396_vm6 }
  0x39   : > { %v289_v15 = vmul.f32 %v960_v61, %v288_v11  ;;  %v392_v21 = vsub.f32 1.0, %v391_v12  ;;  %v414_v23 = vand.u32 2147483647, %v1277_v1  ;;  %v416_v24 = vand.u32 2147483648, %v1277_v1 }
  0x3a   : > { %v1316_v27 = vmul.f32 0.1484375, %v956_v51  ;;  %v964_v31 = vpop.eup %963  ;;  %vm410_vm10 = vweird.f32 %v1277_v1  ;;  %v1319_v28 = vmul.f32 0.28125, %v956_v51  ;;  %v1321_v38 = vadd.f32 1.0, %v958_v56 }
  0x3b   : > { %v290_v35 = vadd.f32 %v960_v61, %v289_v15  ;;  %v393_v39 = vmul.f32 %v962_v10, %v392_v21  ;;  %v302_v43 = vmul.f32 %v964_v31, %v1268_v59  ;;  %vm307_vm11 = vweird.f32 %v964_v31 }
  0x3c   : > { %967 = vpow2.f32 %v1244_v42  ;;  %v1325_v47 = vpop.eup %965  ;;  %v1336_v51 = vor.u32 1.1754944e-38, %v416_v24  ;;  %v1339_v56 = vmul.f32 0.5, %v1316_v27  ;;  %v1342_v2 = vmul.f32 0.5, %v1319_v28  ;;  %vm1372_vm4 = vmor %vm306_vm5, %vm307_vm11 }
  0x3d   : > { %v294_v50 = vsel %vm1306_vm7, %v960_v61, %v290_v35  ;;  %v394_v61 = vadd.f32 %v962_v10, %v393_v39  ;;  %v303_v40 = vsub.f32 1.0, %v302_v43  ;;  %v406_v6 = vmul.f32 %v1325_v47, %v1277_v1 }
  0x3e   : > { %v1346_v42 = vsel %vm1262_vm1, %v298_v52, %v294_v50  ;;  %vm1350_vm14 = vcmp.eq.f32.partialorder %v414_v23, 8.507059e+37  ;;  %vm411_vm0 = vweird.f32 %v1325_v47  ;;  %v441_v52 = vrot.slane %v1339_v56, 2 }
  0x3f   : > { %v321_v11 = vadd.f32 %v1221_v29, %v1346_v42  ;;  %v330_v12 = vadd.f32 %v1223_v30, %v1346_v42  ;;  %v398_v57 = vsel %vm1332_vm12, %v962_v10, %v394_v61  ;;  %vm627_vm1 = vcmask 1043456   ;;  %vm1397_vm6 = vmor %vm410_vm10, %vm411_vm0 }
  0x40   : > { %v304_v15 = vmul.f32 %v964_v31, %v303_v40  ;;  %v407_v20 = vsub.f32 1.0, %v406_v6  ;;  %v451_v21 = vrot.slane %v1342_v2, 2  ;;  %v1367_v35 = vsel %vm1283_vm3, %v1272_v62, %v398_v57 }
  0x41   : > { %v323_v23 = vmul.f32 0.0625, %v321_v11  ;;  %v332_v24 = vmul.f32 0.0625, %v330_v12  ;;  %vm630_vm2 = vcmask 1044480   ;;  %v459_v10 = vrot.slane %v1316_v27, 2 }
  0x42   : > { %v1377_v43 = vpop.eup %967  ;;  %v420_v50 = vadd.f32 %v1367_v35, %v1221_v29  ;;  %v424_v62 = vadd.f32 %v1367_v35, %v1223_v30  ;;  %vm633_vm3 = vcmask 1045504   ;;  %v305_v5 = vadd.f32 %v964_v31, %v304_v15 }
  0x43   : > { %v408_v59 = vmul.f32 %v1325_v47, %v407_v20  ;;  %v350_v53 = vsub.f32 %v323_v23, %v346_v48  ;;  %v360_v61 = vsub.f32 %v332_v24, %v356_v49  ;;  %vm636_vm5 = vcmask 1046528  }
  0x44   : > { %v467_v40 = vrot.slane %v1319_v28, 2  ;;  %969 = vrcp.f32 %v1321_v38  ;;  %v422_v6 = vmul.f32 0.0625, %v420_v50  ;;  %v426_v11 = vmul.f32 0.0625, %v424_v62 }
  0x45   : > { %v309_v12 = vsel %vm1372_vm4, %v964_v31, %v305_v5  ;;  %v409_v57 = vadd.f32 %v1325_v47, %v408_v59  ;;  %v368_v33 = vadd.f32 %v364_v44, %v350_v53  ;;  %v376_v48 = vadd.f32 %v372_v45, %v360_v61 }
  0x46   : > { %v619_v49 = vsel %vm618_vm8, %v350_v53, %v360_v61  ;;  %v1414_v1 = vsel %vm1310_vm9, %v1300_v16, %v309_v12  ;;  %v444_v31 = vsub.f32 %v422_v6, %v440_v3  ;;  %v454_v28 = vsub.f32 %v426_v11, %v450_v4 }
  0x47   : > { %v322_v25 = vadd.f32 %v1231_v34, %v1414_v1  ;;  %v331_v26 = vadd.f32 %v1235_v36, %v1414_v1  ;;  %v572_v44 = vrot.slane %v368_v33, 6  ;;  %v578_v45 = vrot.slane %v376_v48, 6 }
  0x48   : > { %v413_v22 = vsel %vm1397_vm6, %v1325_v47, %v409_v57  ;;  %vm489_vm7 = vweird.f32 %v1321_v38  ;;  %v462_v54 = vadd.f32 %v458_v58, %v444_v31  ;;  %v470_v55 = vadd.f32 %v466_v63, %v454_v28 }
  0x49   : > { %v584_v3 = vrot.slane %v444_v31, 4  ;;  %v590_v4 = vrot.slane %v454_v28, 4  ;;  %v622_v15 = vsel %vm621_vm13, %v619_v49, %v572_v44  ;;  %v324_v20 = vmul.f32 0.0625, %v322_v25 }
  0x4a   : > { %v970_v16 = vpop.eup %969  ;;  %v333_v23 = vmul.f32 0.0625, %v331_v26  ;;  %v1437_v47 = vsel %vm1350_vm14, %v1336_v51, %v413_v22  ;;  %v596_v24 = vrot.slane %v462_v54, 2  ;;  %v602_v41 = vrot.slane %v470_v55, 2 }
  0x4b   : > { %v625_v58 = vsel %vm624_vm15, %v622_v15, %v578_v45  ;;  %v421_v46 = vadd.f32 %v1437_v47, %v1231_v34  ;;  %v351_v39 = vsub.f32 %v324_v20, %v347_v18  ;;  %v425_v7 = vadd.f32 %v1437_v47, %v1235_v36 }
  0x4c   : > { %v628_v63 = vsel %vm627_vm1, %v625_v58, %v584_v3  ;;  %v361_v50 = vsub.f32 %v333_v23, %v357_v19  ;;  %v485_v5 = vmul.f32 %v970_v16, %v1321_v38  ;;  %vm490_vm9 = vweird.f32 %v970_v16 }
  0x4d   : > { %v631_v51 = vsel %vm630_vm2, %v628_v63, %v590_v4  ;;  %v423_v62 = vmul.f32 0.0625, %v421_v46  ;;  %v369_v9 = vadd.f32 %v365_v13, %v351_v39  ;;  %v427_v19 = vmul.f32 0.0625, %v425_v7  ;;  %vm491_vm10 = vmor %vm489_vm7, %vm490_vm9 }
  0x4e   : > { %v634_v8 = vsel %vm633_vm3, %v631_v51, %v596_v24  ;;  %v377_v18 = vadd.f32 %v373_v14, %v361_v50  ;;  %v620_v61 = vsel %vm618_vm8, %v351_v39, %v361_v50  ;;  %v486_v6 = vsub.f32 1.0, %v485_v5 }
  0x4f   : > { %v637_v59 = vsel %vm636_vm5, %v634_v8, %v602_v41  ;;  %v445_v53 = vsub.f32 %v423_v62, %v441_v52  ;;  %v455_v11 = vsub.f32 %v427_v19, %v451_v21  ;;  %v573_v12 = vrot.slane %v369_v9, 6 }
  0x50   : > { %645 = vst [vmem:[%s1454_s26] sm:$0xff] %v637_v59  ;;  %v579_v57 = vrot.slane %v377_v18, 6  ;;  %v493_v60 = vand.u32 2147483647, %v1321_v38  ;;  %v487_v14 = vmul.f32 %v970_v16, %v486_v6  ;;  %v495_v32 = vand.u32 2147483648, %v1321_v38 }
  0x51   : > { %v463_v0 = vadd.f32 %v459_v10, %v445_v53  ;;  %v585_v13 = vrot.slane %v445_v53, 4  ;;  %v471_v56 = vadd.f32 %v467_v40, %v455_v11  ;;  %v591_v52 = vrot.slane %v455_v11, 4 }
  0x52   : > { %v623_v33 = vsel %vm621_vm13, %v620_v61, %v573_v12  ;;  %vm494_vm11 = vcmp.eq.f32.partialorder %v493_v60, 8.507059e+37  ;;  %v488_v48 = vadd.f32 %v970_v16, %v487_v14  ;;  %v496_v49 = vor.u32 1.1754944e-38, %v495_v32 }
  0x53   : > { %v597_v2 = vrot.slane %v463_v0, 2  ;;  %v626_v21 = vsel %vm624_vm15, %v623_v33, %v579_v57  ;;  %v603_v27 = vrot.slane %v471_v56, 2  ;;  %v526_v31 = vmul.f32 0.3125, %v1377_v43 }
  0x54   : > { %v629_v10 = vsel %vm627_vm1, %v626_v21, %v585_v13  ;;  %v528_v40 = vmul.f32 0.21875, %v1377_v43  ;;  %v492_v25 = vsel %vm491_vm10, %v970_v16, %v488_v48  ;;  %971 = vpow2.f32 %v1237_v37 }
  0x55   : > { %v632_v28 = vsel %vm630_vm2, %v629_v10, %v591_v52  ;;  %v1485_v26 = vsel %vm494_vm11, %v496_v49, %v492_v25  ;;  %v530_v44 = vmul.f32 0.5, %v526_v31  ;;  %v524_v43 = vmul.f32 1.442695, %v1212_v17 }
  0x56   : > { %v635_v38 = vsel %vm633_vm3, %v632_v28, %v597_v2  ;;  %v540_v45 = vmul.f32 0.5, %v528_v40  ;;  %v514_v54 = vadd.f32 %v1485_v26, %v1221_v29  ;;  %v518_v55 = vadd.f32 %v1485_v26, %v1223_v30 }
  0x57   : > { %v638_v22 = vsel %vm636_vm5, %v635_v38, %v603_v27  ;;  %v534_v3 = vrot.slane %v530_v44, 2  ;;  %v552_v37 = vrot.slane %v526_v31, 2  ;;  %v560_v16 = vrot.slane %v528_v40, 2 }
  0x58   : > { %646 = vst [vmem:[%s1454_s26 + $0x8] sm:$0xff] %v638_v22  ;;  %v544_v4 = vrot.slane %v540_v45, 2  ;;  %v516_v15 = vmul.f32 0.0625, %v514_v54  ;;  %v520_v20 = vmul.f32 0.0625, %v518_v55  ;;  %v378_v23 = vperm.slane %v1346_v42, 4 }
  0x59   : > { %v472_v24 = vperm.slane %v1367_v35, 4  ;;  %v379_v41 = vperm.slane %v1414_v1, 4  ;;  %v473_v17 = vperm.slane %v1437_v47, 4  ;;  %v657_v50 = vrot.slane %v1346_v42, 1 }
  0x5a   : > { %v972_v58 = vpop.eup %971  ;;  %v538_v29 = vsub.f32 %v516_v15, %v534_v3  ;;  %v548_v46 = vsub.f32 %v520_v20, %v544_v4  ;;  %v380_v30 = vmul.f32 %v378_v23, %v1346_v42  ;;  %973 = vpow2.f32 %v524_v43 }
  0x5b   : > { %v483_v63 = vadd.f32 1.0, %v972_v58  ;;  %v474_v39 = vmul.f32 %v472_v24, %v1367_v35  ;;  %v381_v8 = vmul.f32 %v379_v41, %v1414_v1  ;;  %v669_v19 = vrot.slane %v1367_v35, 5 }
  0x5c   : > { %v556_v7 = vadd.f32 %v552_v37, %v538_v29  ;;  %v564_v51 = vadd.f32 %v560_v16, %v548_v46  ;;  %v651_v62 = vrot.slane %v380_v30, 5  ;;  %v639_v5 = vsel %vm618_vm8, %v538_v29, %v548_v46 }
  0x5d   : > { %975 = vrcp.f32 %v483_v63  ;;  %v475_v59 = vmul.f32 %v473_v17, %v1437_v47  ;;  %v663_v53 = vrot.slane %v474_v39, 1  ;;  %v658_v61 = vrot.slane %v1414_v1, 1 }
  0x5e   : > { %v608_v9 = vrot.slane %v556_v7, 6  ;;  %v614_v18 = vrot.slane %v564_v51, 6  ;;  %v685_v42 = vsel %vm624_vm15, %v651_v62, %v657_v50  ;;  %v652_v12 = vrot.slane %v381_v8, 5 }
  0x5f   : > { %v687_v35 = vsel %vm627_vm1, %v685_v42, %v663_v53  ;;  %v664_v0 = vrot.slane %v475_v59, 1  ;;  %v670_v13 = vrot.slane %v1437_v47, 5  ;;  %v566_v32 = vperm.slane %v1485_v26, 4 }
  0x60   : > { %v641_v6 = vsel %vm621_vm13, %v639_v5, %v608_v9  ;;  %v974_v57 = vpop.eup %973  ;;  %v689_v60 = vsel %vm636_vm5, %v687_v35, %v669_v19  ;;  %v686_v14 = vsel %vm624_vm15, %v652_v12, %v658_v61  ;;  %vm504_vm12 = vweird.f32 %v483_v63 }
  0x61   : > { %v643_v11 = vsel %vm624_vm15, %v641_v6, %v614_v18  ;;  %693 = vst [vmem:[%s1513_s7] sm:$0xff] %v689_v60  ;;  %v510_v52 = vand.u32 2147483648, %v483_v63  ;;  %v688_v33 = vsel %vm627_vm1, %v686_v14, %v664_v0  ;;  %v527_v2 = vmul.f32 0.3125, %v974_v57 }
  0x62   : > { %647 = vst [vmem:[%s1454_s26 + $0x10] sm:$0xf] %v643_v11  ;;  %v690_v21 = vsel %vm636_vm5, %v688_v33, %v670_v13  ;;  %v568_v48 = vmul.f32 %v566_v32, %v1485_v26  ;;  %v681_v49 = vrot.slane %v1485_v26, 1  ;;  %v508_v47 = vand.u32 2147483647, %v483_v63 }
  0x63   : > { %v976_v1 = vpop.eup %975  ;;  %v529_v10 = vmul.f32 0.21875, %v974_v57  ;;  %694 = vst [vmem:[%s1513_s7 + $0x8] sm:$0xff] %v690_v21  ;;  %v511_v28 = vor.u32 1.1754944e-38, %v510_v52  ;;  %v531_v25 = vmul.f32 0.5, %v527_v2  ;;  %v553_v37 = vrot.slane %v527_v2, 2 }
  0x64   : > { %v500_v56 = vmul.f32 %v976_v1, %v483_v63  ;;  %vm505_vm14 = vweird.f32 %v976_v1  ;;  %v675_v31 = vrot.slane %v568_v48, 5  ;;  %vm509_vm1 = vcmp.eq.f32.partialorder %v508_v47, 8.507059e+37 }
  0x65   : > { %vm506_vm0 = vmor %vm504_vm12, %vm505_vm14  ;;  %v541_v45 = vmul.f32 0.5, %v529_v10  ;;  %v535_v55 = vrot.slane %v531_v25, 2  ;;  %v561_v16 = vrot.slane %v529_v10, 2 }
  0x66   : > { %v501_v27 = vsub.f32 1.0, %v500_v56  ;;  %v691_v38 = vsel %vm624_vm15, %v675_v31, %v681_v49 }
  0x67   : > { %695 = vst [vmem:[%s1513_s7 + $0x10] sm:$0xf] %v691_v38  ;;  %v545_v3 = vrot.slane %v541_v45, 2 }
  0x68   : > { %v502_v40 = vmul.f32 %v976_v1, %v501_v27 }
  0x6a   : > { %v503_v44 = vadd.f32 %v976_v1, %v502_v40 }
  0x6c   : > { %v507_v22 = vsel %vm506_vm0, %v976_v1, %v503_v44 }
  0x6d   : > { %v512_v54 = vsel %vm509_vm1, %v511_v28, %v507_v22 }
  0x6e   : > { %v515_v26 = vadd.f32 %v512_v54, %v1231_v34  ;;  %v519_v43 = vadd.f32 %v512_v54, %v1235_v36  ;;  %v567_v4 = vperm.slane %v512_v54, 4  ;;  %v682_v24 = vrot.slane %v512_v54, 1 }
  0x70   : > { %v517_v15 = vmul.f32 0.0625, %v515_v26  ;;  %v521_v20 = vmul.f32 0.0625, %v519_v43  ;;  %v569_v23 = vmul.f32 %v567_v4, %v512_v54 }
  0x72   : > { %v539_v41 = vsub.f32 %v517_v15, %v535_v55  ;;  %v549_v58 = vsub.f32 %v521_v20, %v545_v3  ;;  %v676_v29 = vrot.slane %v569_v23, 5 }
  0x74   : > { %v557_v46 = vadd.f32 %v553_v37, %v539_v41  ;;  %v565_v30 = vadd.f32 %v561_v16, %v549_v58  ;;  %v692_v17 = vsel %vm624_vm15, %v676_v29, %v682_v24  ;;  %v640_v34 = vsel %vm618_vm8, %v539_v41, %v549_v58 }
  0x75   : > { %696 = vst [vmem:[%s1513_s7 + $0x18] sm:$0xf] %v692_v17 }
  0x76   : > { %v609_v36 = vrot.slane %v557_v46, 6  ;;  %v615_v63 = vrot.slane %v565_v30, 6 }
  0x78   : > { %v642_v39 = vsel %vm621_vm13, %v640_v34, %v609_v36 }
  0x79   : > { %v644_v50 = vsel %vm624_vm15, %v642_v39, %v615_v63 }
  0x7a   : > { %648 = vst [vmem:[%s1454_s26 + $0x18] sm:$0xf] %v644_v50 }
  0x7b PF: > { %s18_s17 = sadd.s32 1, %s1091_s17   ;;  %s1581_s12 = smov %s1075_s13 }
  0x7c   : > { %p15_p2 = scmp.ge.s32.totalorder %s18_s17, 4   ;;  %s1582_s13 = smov %s1079_s14 }
  0x7d   : > { %s1583_s14 = smov %s1197_s21  ;;  %s1584_s15 = smov %s1087_s16 }
  0x7e   : > { %s1585_s16 = smov %s1587_s30  ;;  %17 = sbr.rel (!%p15_p2) target bundleno = 5 (0x5), region = 86 }
  0x83   :  { %752 = vsyncpa [#allocation3], 1 }
  0x84   :  { %754 = vsyncpa [#allocation3 + $0x1], 1 }
  0x85   :  { %755 = vsyncpa [#allocation5], 1 }

</bundles_post_ra>
